<compile_context>
chip_gen: v7x
topology: tpu7x:2x2x1
jax: 0.10.0
libtpu: 0.0.40
codegen_flags: <defaults>
</compile_context>

<pallas_src>
import functools

import jax
import jax.numpy as jnp
import numpy as np
from jax.experimental import pallas as pl
from jax.experimental.pallas import tpu as pltpu


def mapping_net_kernel(x_ref, eps_ref, w_ref, b_ref, out_ref, *, seq_len):
    """Weight slab layout (w_ref: (13,H,H), b_ref: (7,1,H)):
       w[0..8]  = conv layer l tap k, index 3*l + k (k=0: t-1, 1: t, 2: t+1)
       w[9,10]  = spec_mean layer0, layer1 ; w[11,12] = spec_var layer0, layer1
       b[0..2]  = conv biases ; b[3,4] = spec_mean b0,b1 ; b[5,6] = spec_var b0,b1
    """
    x = x_ref[...]                       # (BT, H) float32
    BT, H = x.shape

    # Sequence-boundary masks, built in-kernel (a handful of VPU ops, once).
    # Full (BT, H) so the conv loop below does no per-iteration broadcasts.
    t_idx = jax.lax.broadcasted_iota(jnp.int32, (BT, H), 0) % seq_len
    mask_prev = (t_idx >= 1).astype(jnp.float32)            # zero t-1 tap at t == 0
    mask_next = (t_idx <= seq_len - 2).astype(jnp.float32)  # zero t+1 tap at t == T-1

    # --- self.net: Conv1d(3,p=1) -> ReLU -> Conv1d(3,p=1) -> ReLU -> Conv1d(3,p=1)
    # Three accumulated K=H matmuls per layer; no lane concatenation.
    h = x
    for layer in range(3):
        prev = mask_prev * pltpu.roll(h, shift=1, axis=0)        # h[t-1], 0 at seq start
        nxt = mask_next * pltpu.roll(h, shift=BT - 1, axis=0)    # h[t+1], 0 at seq end
        y = (jnp.dot(prev, w_ref[3 * layer + 0], preferred_element_type=jnp.float32)
             + jnp.dot(h,   w_ref[3 * layer + 1], preferred_element_type=jnp.float32)
             + jnp.dot(nxt, w_ref[3 * layer + 2], preferred_element_type=jnp.float32)
             + b_ref[layer])                                     # (1, H) bias broadcast
        h = jnp.maximum(y, 0.0) if layer < 2 else y

    # --- spec_mean / spec_var branches (un-fused: lane-aligned outputs, no slices)
    tm = jnp.maximum(
        jnp.dot(h, w_ref[9], preferred_element_type=jnp.float32) + b_ref[3], 0.0)
    mu = jnp.dot(tm, w_ref[10], preferred_element_type=jnp.float32) + b_ref[4]
    tv = jnp.maximum(
        jnp.dot(h, w_ref[11], preferred_element_type=jnp.float32) + b_ref[5], 0.0)
    logvar = jnp.dot(tv, w_ref[12], preferred_element_type=jnp.float32) + b_ref[6]

    # reparameterize: mu + eps * exp(0.5 * logvar)
    out_ref[...] = mu + eps_ref[...] * jnp.exp(0.5 * logvar)


def mapping_net_forward(x, eps, conv_w, conv_b, lin_w, lin_b):
    """x, eps: (B, T, H). Returns z_specific: (B, T, H)."""
    B, T, H = x.shape
    BT = B * T

    # Collapse batch into the sublane axis -> a single, all-resident kernel step.
    x2 = x.reshape(BT, H)
    eps2 = eps.reshape(BT, H)

    # Pack all parameters into two contiguous f32 slabs (see kernel docstring
    # for the layout) -> 4 kernel inputs total.
    w_stack = jnp.concatenate(
        [conv_w.reshape(9, H, H),                 # conv taps, index = 3*layer + tap
         lin_w[0, 0][None], lin_w[0, 1][None],    # spec_mean W0, W1
         lin_w[1, 0][None], lin_w[1, 1][None]],   # spec_var  W0, W1
        axis=0)                                   # (13, H, H)
    b_stack = jnp.concatenate(
        [conv_b,                                  # (3, 1, H)
         lin_b[0, 0][None], lin_b[0, 1][None],    # spec_mean b0, b1
         lin_b[1, 0][None], lin_b[1, 1][None]],   # spec_var  b0, b1
        axis=0)                                   # (7, 1, H)

    # Advisory cost hint: 13 (BT,H)@(H,H) matmuls + elementwise tail.
    flops = 26 * BT * H * H + 12 * BT * H
    bytes_accessed = 4 * (3 * BT * H + 13 * H * H + 7 * H)

    kernel = functools.partial(mapping_net_kernel, seq_len=T)

    out = pl.pallas_call(
        kernel,
        out_shape=jax.ShapeDtypeStruct((BT, H), jnp.float32),
        grid_spec=pltpu.PrefetchScalarGridSpec(
            num_scalar_prefetch=0,
            grid=(1,),                                        # single step, all in VMEM
            in_specs=[
                pl.BlockSpec((BT, H), lambda i: (0, 0)),          # x
                pl.BlockSpec((BT, H), lambda i: (0, 0)),          # eps
                pl.BlockSpec((13, H, H), lambda i: (0, 0, 0)),    # packed weights
                pl.BlockSpec((7, 1, H), lambda i: (0, 0, 0)),     # packed biases
            ],
            out_specs=pl.BlockSpec((BT, H), lambda i: (0, 0)),
        ),
        compiler_params=pltpu.CompilerParams(
            dimension_semantics=("arbitrary",)),
        cost_estimate=pl.CostEstimate(
            flops=flops, transcendentals=BT * H, bytes_accessed=bytes_accessed),
    )(x2, eps2, w_stack, b_stack)

    return out.reshape(B, T, H)


def reference_forward(x, eps, conv_w, conv_b, lin_w, lin_b):
    """Pure-JAX reference replicating the PyTorch MappingNet.forward exactly."""
    h = jnp.transpose(x, (0, 2, 1))                       # (B, H, T)  == NCT
    for l in range(3):
        # our conv_w[l] is (K, Cin, Cout); lax wants OIH = (Cout, Cin, K)
        w = jnp.transpose(conv_w[l], (2, 1, 0))
        h = jax.lax.conv_general_dilated(
            h, w, window_strides=(1,), padding=((1, 1),),
            dimension_numbers=('NCH', 'OIH', 'NCH'))
        h = h + conv_b[l].reshape(1, -1, 1)
        if l < 2:
            h = jnp.maximum(h, 0.0)
    out = jnp.transpose(h, (0, 2, 1))                     # (B, T, H)

    def mlp(b):
        t = jnp.maximum(out @ lin_w[b, 0] + lin_b[b, 0].reshape(1, 1, -1), 0.0)
        return t @ lin_w[b, 1] + lin_b[b, 1].reshape(1, 1, -1)

    mu, logvar = mlp(0), mlp(1)
    return mu + eps * jnp.exp(0.5 * logvar)


if __name__ == "__main__":
    B, T, H = 2, 8, 32   # batch, seq length, pose_hidden_size

    key = jax.random.PRNGKey(0)
    kx, keps, kcw, kcb, klw, klb = jax.random.split(key, 6)

    x = jax.random.normal(kx, (B, T, H), dtype=jnp.float32)
    eps = jax.random.normal(keps, (B, T, H), dtype=jnp.float32)  # randn_like(logvar)

    # Deterministic synthetic parameters (shapes per module __init__):
    # conv_w[l, k] is the (Cin, Cout) slice of Conv1d weight tap k of layer l.
    conv_w = 0.1 * jax.random.normal(kcw, (3, 3, H, H), dtype=jnp.float32)
    conv_b = 0.1 * jax.random.normal(kcb, (3, 1, H), dtype=jnp.float32)
    # lin_w[branch, layer] is (in, out); branch 0 = spec_mean, 1 = spec_var.
    lin_w = 0.1 * jax.random.normal(klw, (2, 2, H, H), dtype=jnp.float32)
    lin_b = 0.1 * jax.random.normal(klb, (2, 2, 1, H), dtype=jnp.float32)

    z = mapping_net_forward(x, eps, conv_w, conv_b, lin_w, lin_b)
    jax.block_until_ready(z)

    z_ref = reference_forward(x, eps, conv_w, conv_b, lin_w, lin_b)
    np.testing.assert_allclose(np.asarray(z), np.asarray(z_ref),
                               rtol=1e-4, atol=1e-4)

    print("KERNEL_OK")
</pallas_src>

<mosaic_0001>
module attributes {stable_mosaic.version = 11 : i64} {
  func.func @mapping_net_kernel(%arg0: i32, %arg1: memref<16x32xf32, #tpu.memory_space<vmem>>, %arg2: memref<16x32xf32, #tpu.memory_space<vmem>>, %arg3: memref<13x32x32xf32, #tpu.memory_space<vmem>>, %arg4: memref<7x1x32xf32, #tpu.memory_space<vmem>>, %arg5: memref<16x32xf32, #tpu.memory_space<vmem>>) attributes {dimension_semantics = [#tpu.dimension_semantics<arbitrary>], iteration_bounds = array<i64: 1>, scalar_prefetch = 0 : i64, scratch_operands = 0 : i64, tpu.core_type = #tpu.core_type<tc>, window_params = [{pipeline_mode = #tpu.pipeline_mode<synchronous>, transform_indices = @transform_0, window_bounds = array<i64: 16, 32>}, {pipeline_mode = #tpu.pipeline_mode<synchronous>, transform_indices = @transform_1, window_bounds = array<i64: 16, 32>}, {pipeline_mode = #tpu.pipeline_mode<synchronous>, transform_indices = @transform_2, window_bounds = array<i64: 13, 32, 32>}, {pipeline_mode = #tpu.pipeline_mode<synchronous>, transform_indices = @transform_3, window_bounds = array<i64: 7, 1, 32>}, {pipeline_mode = #tpu.pipeline_mode<synchronous>, transform_indices = @transform_4, window_bounds = array<i64: 16, 32>}]} {
    %c0 = arith.constant 0 : index
    %c0_0 = arith.constant 0 : index
    %0 = vector.load %arg1[%c0, %c0_0] : memref<16x32xf32, #tpu.memory_space<vmem>>, vector<16x32xf32>
    %1 = tpu.iota {dimensions = array<i32: 0>} : vector<16x32xi32>
    %c8_i32 = arith.constant 8 : i32
    %c0_i32 = arith.constant 0 : i32
    %2 = arith.cmpi eq, %c8_i32, %c0_i32 : i32
    %c1_i32 = arith.constant 1 : i32
    %3 = arith.select %2, %c1_i32, %c8_i32 : i32
    %4 = vector.broadcast %3 : i32 to vector<16x32xi32>
    %5 = arith.remsi %1, %4 : vector<16x32xi32>
    %c0_i32_1 = arith.constant 0 : i32
    %6 = vector.broadcast %c0_i32_1 : i32 to vector<16x32xi32>
    %7 = arith.cmpi ne, %5, %6 : vector<16x32xi32>
    %c0_i32_2 = arith.constant 0 : i32
    %8 = vector.broadcast %c0_i32_2 : i32 to vector<16x32xi32>
    %9 = arith.cmpi slt, %5, %8 : vector<16x32xi32>
    %c0_i32_3 = arith.constant 0 : i32
    %10 = arith.cmpi slt, %3, %c0_i32_3 : i32
    %11 = vector.broadcast %10 : i1 to vector<16x32xi1>
    %12 = vector.broadcast %11 : vector<16x32xi1> to vector<16x32xi1>
    %13 = arith.xori %9, %12 : vector<16x32xi1>
    %14 = arith.andi %13, %7 : vector<16x32xi1>
    %15 = vector.broadcast %3 : i32 to vector<16x32xi32>
    %16 = arith.addi %5, %15 : vector<16x32xi32>
    %17 = arith.select %14, %16, %5 : vector<16x32xi1>, vector<16x32xi32>
    %c1_i32_4 = arith.constant 1 : i32
    %18 = vector.broadcast %c1_i32_4 : i32 to vector<16x32xi32>
    %19 = arith.cmpi sge, %17, %18 : vector<16x32xi32>
    %20 = arith.extui %19 : vector<16x32xi1> to vector<16x32xi32>
    %21 = arith.sitofp %20 : vector<16x32xi32> to vector<16x32xf32>
    %c6_i32 = arith.constant 6 : i32
    %22 = vector.broadcast %c6_i32 : i32 to vector<16x32xi32>
    %23 = arith.cmpi sle, %17, %22 : vector<16x32xi32>
    %24 = arith.extui %23 : vector<16x32xi1> to vector<16x32xi32>
    %25 = arith.sitofp %24 : vector<16x32xi32> to vector<16x32xf32>
    %c1_i32_5 = arith.constant 1 : i32
    %26 = tpu.dynamic_rotate %0 by %c1_i32_5 dim 0 : vector<16x32xf32>, i32 -> vector<16x32xf32>
    %27 = arith.mulf %21, %26 : vector<16x32xf32>
    %c15_i32 = arith.constant 15 : i32
    %28 = tpu.dynamic_rotate %0 by %c15_i32 dim 0 : vector<16x32xf32>, i32 -> vector<16x32xf32>
    %29 = arith.mulf %25, %28 : vector<16x32xf32>
    %c0_6 = arith.constant 0 : index
    %c0_7 = arith.constant 0 : index
    %c0_8 = arith.constant 0 : index
    %30 = vector.load %arg3[%c0_6, %c0_7, %c0_8] : memref<13x32x32xf32, #tpu.memory_space<vmem>>, vector<1x32x32xf32>
    %31 = vector.shape_cast %30 : vector<1x32x32xf32> to vector<32x32xf32>
    %cst = arith.constant dense<0.000000e+00> : vector<16x32xf32>
    %32 = tpu.matmul %27, %31, %cst {dimension_numbers = #tpu.dot_dimension_numbers<[1], [0], [0], [1], [0, 0, 1, 1], [], []>} : vector<16x32xf32>, vector<32x32xf32>, vector<16x32xf32> -> vector<16x32xf32>
    %c1 = arith.constant 1 : index
    %c0_9 = arith.constant 0 : index
    %c0_10 = arith.constant 0 : index
    %33 = vector.load %arg3[%c1, %c0_9, %c0_10] : memref<13x32x32xf32, #tpu.memory_space<vmem>>, vector<1x32x32xf32>
    %34 = vector.shape_cast %33 : vector<1x32x32xf32> to vector<32x32xf32>
    %cst_11 = arith.constant dense<0.000000e+00> : vector<16x32xf32>
    %35 = tpu.matmul %0, %34, %cst_11 {dimension_numbers = #tpu.dot_dimension_numbers<[1], [0], [0], [1], [0, 0, 1, 1], [], []>} : vector<16x32xf32>, vector<32x32xf32>, vector<16x32xf32> -> vector<16x32xf32>
    %36 = arith.addf %32, %35 : vector<16x32xf32>
    %c2 = arith.constant 2 : index
    %c0_12 = arith.constant 0 : index
    %c0_13 = arith.constant 0 : index
    %37 = vector.load %arg3[%c2, %c0_12, %c0_13] : memref<13x32x32xf32, #tpu.memory_space<vmem>>, vector<1x32x32xf32>
    %38 = vector.shape_cast %37 : vector<1x32x32xf32> to vector<32x32xf32>
    %cst_14 = arith.constant dense<0.000000e+00> : vector<16x32xf32>
    %39 = tpu.matmul %29, %38, %cst_14 {dimension_numbers = #tpu.dot_dimension_numbers<[1], [0], [0], [1], [0, 0, 1, 1], [], []>} : vector<16x32xf32>, vector<32x32xf32>, vector<16x32xf32> -> vector<16x32xf32>
    %40 = arith.addf %36, %39 : vector<16x32xf32>
    %c0_15 = arith.constant 0 : index
    %c0_16 = arith.constant 0 : index
    %c0_17 = arith.constant 0 : index
    %41 = vector.load %arg4[%c0_15, %c0_16, %c0_17] : memref<7x1x32xf32, #tpu.memory_space<vmem>>, vector<1x1x32xf32>
    %42 = vector.shape_cast %41 : vector<1x1x32xf32> to vector<1x32xf32>
    %43 = vector.broadcast %42 : vector<1x32xf32> to vector<16x32xf32>
    %44 = arith.addf %40, %43 : vector<16x32xf32>
    %cst_18 = arith.constant 0.000000e+00 : f32
    %45 = vector.broadcast %cst_18 : f32 to vector<16x32xf32>
    %46 = arith.maximumf %44, %45 : vector<16x32xf32>
    %c1_i32_19 = arith.constant 1 : i32
    %47 = tpu.dynamic_rotate %46 by %c1_i32_19 dim 0 : vector<16x32xf32>, i32 -> vector<16x32xf32>
    %48 = arith.mulf %21, %47 : vector<16x32xf32>
    %c15_i32_20 = arith.constant 15 : i32
    %49 = tpu.dynamic_rotate %46 by %c15_i32_20 dim 0 : vector<16x32xf32>, i32 -> vector<16x32xf32>
    %50 = arith.mulf %25, %49 : vector<16x32xf32>
    %c3 = arith.constant 3 : index
    %c0_21 = arith.constant 0 : index
    %c0_22 = arith.constant 0 : index
    %51 = vector.load %arg3[%c3, %c0_21, %c0_22] : memref<13x32x32xf32, #tpu.memory_space<vmem>>, vector<1x32x32xf32>
    %52 = vector.shape_cast %51 : vector<1x32x32xf32> to vector<32x32xf32>
    %cst_23 = arith.constant dense<0.000000e+00> : vector<16x32xf32>
    %53 = tpu.matmul %48, %52, %cst_23 {dimension_numbers = #tpu.dot_dimension_numbers<[1], [0], [0], [1], [0, 0, 1, 1], [], []>} : vector<16x32xf32>, vector<32x32xf32>, vector<16x32xf32> -> vector<16x32xf32>
    %c4 = arith.constant 4 : index
    %c0_24 = arith.constant 0 : index
    %c0_25 = arith.constant 0 : index
    %54 = vector.load %arg3[%c4, %c0_24, %c0_25] : memref<13x32x32xf32, #tpu.memory_space<vmem>>, vector<1x32x32xf32>
    %55 = vector.shape_cast %54 : vector<1x32x32xf32> to vector<32x32xf32>
    %cst_26 = arith.constant dense<0.000000e+00> : vector<16x32xf32>
    %56 = tpu.matmul %46, %55, %cst_26 {dimension_numbers = #tpu.dot_dimension_numbers<[1], [0], [0], [1], [0, 0, 1, 1], [], []>} : vector<16x32xf32>, vector<32x32xf32>, vector<16x32xf32> -> vector<16x32xf32>
    %57 = arith.addf %53, %56 : vector<16x32xf32>
    %c5 = arith.constant 5 : index
    %c0_27 = arith.constant 0 : index
    %c0_28 = arith.constant 0 : index
    %58 = vector.load %arg3[%c5, %c0_27, %c0_28] : memref<13x32x32xf32, #tpu.memory_space<vmem>>, vector<1x32x32xf32>
    %59 = vector.shape_cast %58 : vector<1x32x32xf32> to vector<32x32xf32>
    %cst_29 = arith.constant dense<0.000000e+00> : vector<16x32xf32>
    %60 = tpu.matmul %50, %59, %cst_29 {dimension_numbers = #tpu.dot_dimension_numbers<[1], [0], [0], [1], [0, 0, 1, 1], [], []>} : vector<16x32xf32>, vector<32x32xf32>, vector<16x32xf32> -> vector<16x32xf32>
    %61 = arith.addf %57, %60 : vector<16x32xf32>
    %c1_30 = arith.constant 1 : index
    %c0_31 = arith.constant 0 : index
    %c0_32 = arith.constant 0 : index
    %62 = vector.load %arg4[%c1_30, %c0_31, %c0_32] : memref<7x1x32xf32, #tpu.memory_space<vmem>>, vector<1x1x32xf32>
    %63 = vector.shape_cast %62 : vector<1x1x32xf32> to vector<1x32xf32>
    %64 = vector.broadcast %63 : vector<1x32xf32> to vector<16x32xf32>
    %65 = arith.addf %61, %64 : vector<16x32xf32>
    %cst_33 = arith.constant 0.000000e+00 : f32
    %66 = vector.broadcast %cst_33 : f32 to vector<16x32xf32>
    %67 = arith.maximumf %65, %66 : vector<16x32xf32>
    %c1_i32_34 = arith.constant 1 : i32
    %68 = tpu.dynamic_rotate %67 by %c1_i32_34 dim 0 : vector<16x32xf32>, i32 -> vector<16x32xf32>
    %69 = arith.mulf %21, %68 : vector<16x32xf32>
    %c15_i32_35 = arith.constant 15 : i32
    %70 = tpu.dynamic_rotate %67 by %c15_i32_35 dim 0 : vector<16x32xf32>, i32 -> vector<16x32xf32>
    %71 = arith.mulf %25, %70 : vector<16x32xf32>
    %c6 = arith.constant 6 : index
    %c0_36 = arith.constant 0 : index
    %c0_37 = arith.constant 0 : index
    %72 = vector.load %arg3[%c6, %c0_36, %c0_37] : memref<13x32x32xf32, #tpu.memory_space<vmem>>, vector<1x32x32xf32>
    %73 = vector.shape_cast %72 : vector<1x32x32xf32> to vector<32x32xf32>
    %cst_38 = arith.constant dense<0.000000e+00> : vector<16x32xf32>
    %74 = tpu.matmul %69, %73, %cst_38 {dimension_numbers = #tpu.dot_dimension_numbers<[1], [0], [0], [1], [0, 0, 1, 1], [], []>} : vector<16x32xf32>, vector<32x32xf32>, vector<16x32xf32> -> vector<16x32xf32>
    %c7 = arith.constant 7 : index
    %c0_39 = arith.constant 0 : index
    %c0_40 = arith.constant 0 : index
    %75 = vector.load %arg3[%c7, %c0_39, %c0_40] : memref<13x32x32xf32, #tpu.memory_space<vmem>>, vector<1x32x32xf32>
    %76 = vector.shape_cast %75 : vector<1x32x32xf32> to vector<32x32xf32>
    %cst_41 = arith.constant dense<0.000000e+00> : vector<16x32xf32>
    %77 = tpu.matmul %67, %76, %cst_41 {dimension_numbers = #tpu.dot_dimension_numbers<[1], [0], [0], [1], [0, 0, 1, 1], [], []>} : vector<16x32xf32>, vector<32x32xf32>, vector<16x32xf32> -> vector<16x32xf32>
    %78 = arith.addf %74, %77 : vector<16x32xf32>
    %c8 = arith.constant 8 : index
    %c0_42 = arith.constant 0 : index
    %c0_43 = arith.constant 0 : index
    %79 = vector.load %arg3[%c8, %c0_42, %c0_43] : memref<13x32x32xf32, #tpu.memory_space<vmem>>, vector<1x32x32xf32>
    %80 = vector.shape_cast %79 : vector<1x32x32xf32> to vector<32x32xf32>
    %cst_44 = arith.constant dense<0.000000e+00> : vector<16x32xf32>
    %81 = tpu.matmul %71, %80, %cst_44 {dimension_numbers = #tpu.dot_dimension_numbers<[1], [0], [0], [1], [0, 0, 1, 1], [], []>} : vector<16x32xf32>, vector<32x32xf32>, vector<16x32xf32> -> vector<16x32xf32>
    %82 = arith.addf %78, %81 : vector<16x32xf32>
    %c2_45 = arith.constant 2 : index
    %c0_46 = arith.constant 0 : index
    %c0_47 = arith.constant 0 : index
    %83 = vector.load %arg4[%c2_45, %c0_46, %c0_47] : memref<7x1x32xf32, #tpu.memory_space<vmem>>, vector<1x1x32xf32>
    %84 = vector.shape_cast %83 : vector<1x1x32xf32> to vector<1x32xf32>
    %85 = vector.broadcast %84 : vector<1x32xf32> to vector<16x32xf32>
    %86 = arith.addf %82, %85 : vector<16x32xf32>
    %c9 = arith.constant 9 : index
    %c0_48 = arith.constant 0 : index
    %c0_49 = arith.constant 0 : index
    %87 = vector.load %arg3[%c9, %c0_48, %c0_49] : memref<13x32x32xf32, #tpu.memory_space<vmem>>, vector<1x32x32xf32>
    %88 = vector.shape_cast %87 : vector<1x32x32xf32> to vector<32x32xf32>
    %cst_50 = arith.constant dense<0.000000e+00> : vector<16x32xf32>
    %89 = tpu.matmul %86, %88, %cst_50 {dimension_numbers = #tpu.dot_dimension_numbers<[1], [0], [0], [1], [0, 0, 1, 1], [], []>} : vector<16x32xf32>, vector<32x32xf32>, vector<16x32xf32> -> vector<16x32xf32>
    %c3_51 = arith.constant 3 : index
    %c0_52 = arith.constant 0 : index
    %c0_53 = arith.constant 0 : index
    %90 = vector.load %arg4[%c3_51, %c0_52, %c0_53] : memref<7x1x32xf32, #tpu.memory_space<vmem>>, vector<1x1x32xf32>
    %91 = vector.shape_cast %90 : vector<1x1x32xf32> to vector<1x32xf32>
    %92 = vector.broadcast %91 : vector<1x32xf32> to vector<16x32xf32>
    %93 = arith.addf %89, %92 : vector<16x32xf32>
    %cst_54 = arith.constant 0.000000e+00 : f32
    %94 = vector.broadcast %cst_54 : f32 to vector<16x32xf32>
    %95 = arith.maximumf %93, %94 : vector<16x32xf32>
    %c10 = arith.constant 10 : index
    %c0_55 = arith.constant 0 : index
    %c0_56 = arith.constant 0 : index
    %96 = vector.load %arg3[%c10, %c0_55, %c0_56] : memref<13x32x32xf32, #tpu.memory_space<vmem>>, vector<1x32x32xf32>
    %97 = vector.shape_cast %96 : vector<1x32x32xf32> to vector<32x32xf32>
    %cst_57 = arith.constant dense<0.000000e+00> : vector<16x32xf32>
    %98 = tpu.matmul %95, %97, %cst_57 {dimension_numbers = #tpu.dot_dimension_numbers<[1], [0], [0], [1], [0, 0, 1, 1], [], []>} : vector<16x32xf32>, vector<32x32xf32>, vector<16x32xf32> -> vector<16x32xf32>
    %c4_58 = arith.constant 4 : index
    %c0_59 = arith.constant 0 : index
    %c0_60 = arith.constant 0 : index
    %99 = vector.load %arg4[%c4_58, %c0_59, %c0_60] : memref<7x1x32xf32, #tpu.memory_space<vmem>>, vector<1x1x32xf32>
    %100 = vector.shape_cast %99 : vector<1x1x32xf32> to vector<1x32xf32>
    %101 = vector.broadcast %100 : vector<1x32xf32> to vector<16x32xf32>
    %102 = arith.addf %98, %101 : vector<16x32xf32>
    %c11 = arith.constant 11 : index
    %c0_61 = arith.constant 0 : index
    %c0_62 = arith.constant 0 : index
    %103 = vector.load %arg3[%c11, %c0_61, %c0_62] : memref<13x32x32xf32, #tpu.memory_space<vmem>>, vector<1x32x32xf32>
    %104 = vector.shape_cast %103 : vector<1x32x32xf32> to vector<32x32xf32>
    %cst_63 = arith.constant dense<0.000000e+00> : vector<16x32xf32>
    %105 = tpu.matmul %86, %104, %cst_63 {dimension_numbers = #tpu.dot_dimension_numbers<[1], [0], [0], [1], [0, 0, 1, 1], [], []>} : vector<16x32xf32>, vector<32x32xf32>, vector<16x32xf32> -> vector<16x32xf32>
    %c5_64 = arith.constant 5 : index
    %c0_65 = arith.constant 0 : index
    %c0_66 = arith.constant 0 : index
    %106 = vector.load %arg4[%c5_64, %c0_65, %c0_66] : memref<7x1x32xf32, #tpu.memory_space<vmem>>, vector<1x1x32xf32>
    %107 = vector.shape_cast %106 : vector<1x1x32xf32> to vector<1x32xf32>
    %108 = vector.broadcast %107 : vector<1x32xf32> to vector<16x32xf32>
    %109 = arith.addf %105, %108 : vector<16x32xf32>
    %cst_67 = arith.constant 0.000000e+00 : f32
    %110 = vector.broadcast %cst_67 : f32 to vector<16x32xf32>
    %111 = arith.maximumf %109, %110 : vector<16x32xf32>
    %c12 = arith.constant 12 : index
    %c0_68 = arith.constant 0 : index
    %c0_69 = arith.constant 0 : index
    %112 = vector.load %arg3[%c12, %c0_68, %c0_69] : memref<13x32x32xf32, #tpu.memory_space<vmem>>, vector<1x32x32xf32>
    %113 = vector.shape_cast %112 : vector<1x32x32xf32> to vector<32x32xf32>
    %cst_70 = arith.constant dense<0.000000e+00> : vector<16x32xf32>
    %114 = tpu.matmul %111, %113, %cst_70 {dimension_numbers = #tpu.dot_dimension_numbers<[1], [0], [0], [1], [0, 0, 1, 1], [], []>} : vector<16x32xf32>, vector<32x32xf32>, vector<16x32xf32> -> vector<16x32xf32>
    %c6_71 = arith.constant 6 : index
    %c0_72 = arith.constant 0 : index
    %c0_73 = arith.constant 0 : index
    %115 = vector.load %arg4[%c6_71, %c0_72, %c0_73] : memref<7x1x32xf32, #tpu.memory_space<vmem>>, vector<1x1x32xf32>
    %116 = vector.shape_cast %115 : vector<1x1x32xf32> to vector<1x32xf32>
    %117 = vector.broadcast %116 : vector<1x32xf32> to vector<16x32xf32>
    %118 = arith.addf %114, %117 : vector<16x32xf32>
    %c0_74 = arith.constant 0 : index
    %c0_75 = arith.constant 0 : index
    %119 = vector.load %arg2[%c0_74, %c0_75] : memref<16x32xf32, #tpu.memory_space<vmem>>, vector<16x32xf32>
    %cst_76 = arith.constant 5.000000e-01 : f32
    %120 = vector.broadcast %cst_76 : f32 to vector<16x32xf32>
    %121 = arith.mulf %120, %118 : vector<16x32xf32>
    %122 = math.exp %121 : vector<16x32xf32>
    %123 = arith.mulf %119, %122 : vector<16x32xf32>
    %124 = arith.addf %102, %123 : vector<16x32xf32>
    %c0_77 = arith.constant 0 : index
    %c0_78 = arith.constant 0 : index
    %125 = vector.load %arg5[%c0_77, %c0_78] : memref<16x32xf32, #tpu.memory_space<vmem>>, vector<16x32xf32>
    tpu.vector_store %arg5[%c0_77, %c0_78], %124 {strides = array<i32>} : memref<16x32xf32, #tpu.memory_space<vmem>>, vector<16x32xf32>,
    return
  }
  func.func @transform_0(%arg0: i32) -> (i32, i32) {
    %c0_i32 = arith.constant 0 : i32
    %c0_i32_0 = arith.constant 0 : i32
    %c0_i32_1 = arith.constant 0 : i32
    return %c0_i32, %c0_i32_0 : i32, i32
  }
  func.func @transform_1(%arg0: i32) -> (i32, i32) {
    %c0_i32 = arith.constant 0 : i32
    %c0_i32_0 = arith.constant 0 : i32
    %c0_i32_1 = arith.constant 0 : i32
    return %c0_i32, %c0_i32_0 : i32, i32
  }
  func.func @transform_2(%arg0: i32) -> (i32, i32, i32) {
    %c0_i32 = arith.constant 0 : i32
    %c0_i32_0 = arith.constant 0 : i32
    %c0_i32_1 = arith.constant 0 : i32
    %c0_i32_2 = arith.constant 0 : i32
    return %c0_i32, %c0_i32_0, %c0_i32_1 : i32, i32, i32
  }
  func.func @transform_3(%arg0: i32) -> (i32, i32, i32) {
    %c0_i32 = arith.constant 0 : i32
    %c0_i32_0 = arith.constant 0 : i32
    %c0_i32_1 = arith.constant 0 : i32
    %c0_i32_2 = arith.constant 0 : i32
    return %c0_i32, %c0_i32_0, %c0_i32_1 : i32, i32, i32
  }
  func.func @transform_4(%arg0: i32) -> (i32, i32) {
    %c0_i32 = arith.constant 0 : i32
    %c0_i32_0 = arith.constant 0 : i32
    %c0_i32_1 = arith.constant 0 : i32
    return %c0_i32, %c0_i32_0 : i32, i32
  }
}

</mosaic_0001>

<bundles_post_ra>
// kernel: tpu_custom_call.1
= control target key start
LH: loop header
LB: loop body
LE: loop exit
PB: predicated region body
PF: predicated region fallthrough
CT: control target
= control target key end

     0   :  { %9 = vsyncpa [#allocation3], 0  ;;  %s2040_s0 = inlined_call_operand.hbm [shape: f32[16,32], index: 0, kind: input, shape index: {}]   ;;  %s2041_s1 = inlined_call_operand.hbm [shape: f32[16,32], index: 1, kind: input, shape index: {}]   ;;  %s2042_s2 = inlined_call_operand.hbm [shape: f32[13,32,32], index: 2, kind: input, shape index: {}]   ;;  %s2043_s3 = inlined_call_operand.vmem [shape: f32[7,1,32], index: 3, kind: input, shape index: {}]   ;;  %s2044_s4 = inlined_call_operand.hbm [shape: f32[16,32], index: 4, kind: output, shape index: {}]  }
   0x1   :  { %10 = vsyncpa [#allocation6], 0 }
   0x2   :  { %11 = vsyncpa [#allocation4], 0  ;;  %s1842_s15 = smov [#allocation5]   ;;  %s1843_s17 = smov [#allocation2]  }
   0x3   :  { %s29_s16 = sshll.u32 %s1842_s15, 4  ;;  %s17_s18 = sshll.u32 %s1843_s17, 4  ;;  %s30_s16 = int_to_ptr.vmem [resolvable:$true] %s29_s16  ;;  %s1874_s18 = int_to_ptr.vmem [resolvable:$true] %s17_s18 }
   0x4   :  { %s1748_s21 = scalar_lea.hbm %s2041_s1, 256 }
   0x5   :  { %p1749_p0 = scmp.ne.s32.totalorder %s2041_s1, %s1748_s21  ;;  %p1752_p1 = scmp.lt.u32.totalorder %s1748_s21, %s2041_s1 }
   0x7   :  { %p1754_p2 = pnand %p1752_p1, %p1749_p0 }
   0x9   :  { %1757 = shalt.err (!%p1754_p2)
}
   0xa   :  { %s1758_s26 = scalar_lea.vmem %s30_s16, 256  ;;  %p1763_p4 = scmp.lt.s32.totalorder %s30_s16, %s30_s16 }
   0xb   :  { %p1759_p3 = scmp.ne.s32.totalorder %s30_s16, %s1758_s26  ;;  %p1764_p5 = scmp.lt.s32.totalorder %s1758_s26, %s1758_s26 }
   0xd   :  { %p1765_p6 = por %p1764_p5, %p1763_p4 }
   0xf   :  { %p1766_p7 = pnand %p1765_p6, %p1759_p3 }
  0x11   :  { %1769 = shalt.err (!%p1766_p7)
}
  0x12   :  { %s1844_s27 = smov 128   ;;  %s1845_s28 = smov 8  }
  0x13   :  { %35 = dma.hbm_to_vmem [thread:$0]  %s2041_s1, 256, %s30_s16, [#allocation6], %s1844_s27, %s1844_s27, %s1845_s28  }
  0x14   :  { %s1770_s7 = scalar_lea.hbm %s2040_s0, 256 }
  0x15   :  { %p1771_p8 = scmp.ne.s32.totalorder %s2040_s0, %s1770_s7  ;;  %p1774_p9 = scmp.lt.u32.totalorder %s1770_s7, %s2040_s0 }
  0x17   :  { %p1776_p10 = pnand %p1774_p9, %p1771_p8 }
  0x19   :  { %1779 = shalt.err (!%p1776_p10)
}
  0x1a   :  { %s1780_s12 = scalar_lea.vmem %s1874_s18, 256  ;;  %p1785_p12 = scmp.lt.s32.totalorder %s1874_s18, %s1874_s18 }
  0x1b   :  { %p1781_p11 = scmp.ne.s32.totalorder %s1874_s18, %s1780_s12  ;;  %p1786_p13 = scmp.lt.s32.totalorder %s1780_s12, %s1780_s12 }
  0x1d   :  { %p1787_p0 = por %p1786_p13, %p1785_p12 }
  0x1f   :  { %p1788_p1 = pnand %p1787_p0, %p1781_p11 }
  0x21   :  { %1791 = shalt.err (!%p1788_p1)
}
  0x22   :  { %23 = dma.hbm_to_vmem [thread:$0]  %s2040_s0, 256, %s1874_s18, [#allocation3], %s1844_s27, %s1844_s27, %s1845_s28  }
  0x23   :  { %s1846_s14 = smov [#allocation7]   ;;  %s1792_s19 = scalar_lea.hbm %s2042_s2, 6656 }
  0x24   :  { %s41_s15 = sshll.u32 %s1846_s14, 4  ;;  %p1793_p2 = scmp.ne.s32.totalorder %s2042_s2, %s1792_s19  ;;  %s42_s15 = int_to_ptr.vmem [resolvable:$true] %s41_s15 }
  0x25   :  { %p1796_p3 = scmp.lt.u32.totalorder %s1792_s19, %s2042_s2 }
  0x27   :  { %p1798_p4 = pnand %p1796_p3, %p1793_p2 }
  0x29   :  { %1801 = shalt.err (!%p1798_p4)
}
  0x2a   :  { %s1802_s24 = scalar_lea.vmem %s42_s15, 6656  ;;  %p1807_p6 = scmp.lt.s32.totalorder %s42_s15, %s42_s15 }
  0x2b   :  { %p1803_p5 = scmp.ne.s32.totalorder %s42_s15, %s1802_s24  ;;  %p1808_p7 = scmp.lt.s32.totalorder %s1802_s24, %s1802_s24 }
  0x2d   :  { %p1809_p8 = por %p1808_p7, %p1807_p6 }
  0x2f   :  { %p1810_p9 = pnand %p1809_p8, %p1803_p5 }
  0x31   :  { %1813 = shalt.err (!%p1810_p9)
}
  0x32   :  { %47 = dma.hbm_to_vmem [thread:$0]  %s2042_s2, 6656, %s42_s15, [#allocation6], %s1844_s27, %s1844_s27, %s1845_s28  }
  0x33   :  { %1836 = dma.done.wait [#allocation3], 256  }
  0x34   :  { %1837 = vsyncadd [#allocation3], 4294967040 }
  0x35   :  { %1838 = dma.done.wait [#allocation6], 6912  }
  0x36   :  { %1839 = vsyncadd [#allocation6], 4294960384  ;;  %v61_v0 = vlaneseq  ;;  %vm123_vm0 = vcmask 261120   ;;  %v119_v3 = vld [vmem:[#allocation7 + $0x20] sm:$0xff]  ;;  %v120_v4 = vld [vmem:[#allocation7 + $0x28] sm:$0xff]  ;;  %v1847_v19 = vmov 0.0  }
  0x37   :  { %v121_v5 = vld [vmem:[#allocation7 + $0x30] sm:$0xff]  ;;  %v1621_v6 = vpack.c.bf16 %v120_v4, %v119_v3  ;;  %v122_v7 = vld [vmem:[#allocation7 + $0x38] sm:$0xff]  ;;  %v59_v8 = vld [vmem:[#allocation2] sm:$0xff]  ;;  %s1848_s13 = smov [#allocation8]  }
  0x38   :  { %v1926_v1 = vshrl.u32 %v61_v0, 7  ;;  %v1625_v10 = vpack.c.bf16 %v122_v7, %v121_v5  ;;  %v100_v11 = vrot.slane %v59_v8, 7  ;;  %1486 = vmatprep.mubr.msk.f32.mxu0 %vm123_vm0, %v59_v8  ;;  %v60_v12 = vld [vmem:[#allocation2 + $0x8] sm:$0xff]  ;;  %v114_v13 = vld [vmem:[#allocation7] sm:$0xff]  ;;  %v116_v23 = vld [vmem:[#allocation7 + $0x10] sm:$0xff]  ;;  %v107_v27 = vrot.slane %v59_v8, 1 }
  0x39   :  { %v115_v14 = vld [vmem:[#allocation7 + $0x8] sm:$0xff]  ;;  %1622 = vmatprep.subr.bf16.mxu0 %v1621_v6  ;;  %v101_v15 = vrot.slane %v60_v12, 7  ;;  %v403_v16 = vld [vmem:[#allocation7 + $0x80] sm:$0xff]  ;;  %v117_v24 = vld [vmem:[#allocation7 + $0x18] sm:$0xff]  ;;  %v108_v28 = vrot.slane %v60_v12, 1  ;;  %s1344_s14 = sshll.u32 %s1848_s13, 4  ;;  %s1345_s14 = int_to_ptr.vmem [resolvable:$true] %s1344_s14 }
  0x3a   :  { %v68_v2 = vand.u32 7, %v1926_v1  ;;  %v63_v9 = vadd.s32 8, %v1926_v1  ;;  %vm102_vm1 = vcmp.lt.s32.totalorder %v1926_v1, 1  ;;  %1624 = vmatpush3.bf16.msra.mxu0 %v1621_v6  ;;  %v1629_v18 = vpack.c.bf16 %v115_v14, %v114_v13  ;;  %v404_v22 = vld [vmem:[#allocation7 + $0x88] sm:$0xff]  ;;  %v287_v30 = vld [vmem:[#allocation7 + $0x40] sm:$0xff]  ;;  %v289_v37 = vld [vmem:[#allocation7 + $0x50] sm:$0xff]  ;;  %p1819_p11 = scmp.lt.s32.totalorder %s1345_s14, %s1345_s14 }
  0x3b   :  { %1626 = vmatprep.subr.bf16.mxu0 %v1625_v10  ;;  %v104_v21 = vsel %vm102_vm1, %v101_v15, %v100_v11  ;;  %v1645_v25 = vpack.c.bf16 %v404_v22, %v403_v16  ;;  %v1633_v29 = vpack.c.bf16 %v117_v24, %v116_v23  ;;  %vm109_vm4 = vcmp.lt.s32.totalorder %v1926_v1, 7  ;;  %v288_v31 = vld [vmem:[#allocation7 + $0x48] sm:$0xff]  ;;  %v290_v38 = vld [vmem:[#allocation7 + $0x58] sm:$0xff]  ;;  %v405_v45 = vld [vmem:[#allocation7 + $0x90] sm:$0xff]  ;;  %s1814_s15 = scalar_lea.vmem %s1345_s14, 256 }
  0x3c   :  { %vm88_vm2 = vcmp.ge.s32.totalorder %v68_v2, 1  ;;  %v75_v17 = vand.u32 7, %v63_v9  ;;  %vm94_vm5 = vcmp.le.s32.totalorder %v68_v2, 6  ;;  %v103_v33 = vsel %vm102_vm1, %v100_v11, %v101_v15  ;;  %v406_v46 = vld [vmem:[#allocation7 + $0x98] sm:$0xff]  ;;  %v398_v48 = vld [vmem:[#allocation7 + $0x60] sm:$0xff]  ;;  %v399_v49 = vld [vmem:[#allocation7 + $0x68] sm:$0xff]  ;;  %p1815_p10 = scmp.ne.s32.totalorder %s1345_s14, %s1814_s15  ;;  %p1820_p12 = scmp.lt.s32.totalorder %s1814_s15, %s1814_s15 }
  0x3d   :  { %v1932_v20 = vsel %vm88_vm2, 1.0, %v1847_v19  ;;  %1646 = vmatprep.subr.bf16.mxu1 %v1645_v25  ;;  %v1637_v34 = vpack.c.bf16 %v288_v31, %v287_v30  ;;  %v1944_v35 = vsel %vm94_vm5, 1.0, %v1847_v19  ;;  %v110_v36 = vsel %vm109_vm4, %v107_v27, %v108_v28  ;;  %v687_v51 = vld [vmem:[#allocation7 + $0xe0] sm:$0xff]  ;;  %v688_v52 = vld [vmem:[#allocation7 + $0xe8] sm:$0xff]  ;;  %v400_v59 = vld [vmem:[#allocation7 + $0x70] sm:$0xff] }
  0x3e   :  { %1628 = vmatpush3.bf16.msra.mxu0 %v1625_v10  ;;  %v105_v26 = vmul.f32 %v1932_v20, %v104_v21  ;;  %vm89_vm3 = vcmp.ge.s32.totalorder %v75_v17, 1  ;;  %1648 = vmatpush3.bf16.msra.mxu1 %v1645_v25  ;;  %v112_v40 = vmul.f32 %v1944_v35, %v110_v36  ;;  %vm95_vm6 = vcmp.le.s32.totalorder %v75_v17, 6  ;;  %v1367_v54 = vld [vmem:[%s2043_s3] ss:$0 sm:$0xff]  ;;  %v401_v60 = vld [vmem:[#allocation7 + $0x78] sm:$0xff]  ;;  %v571_v6 = vld [vmem:[#allocation7 + $0xa8] sm:$0xff]  ;;  %p1821_p13 = por %p1820_p12, %p1819_p11 }
  0x3f   :  { %1630 = vmatprep.subr.bf16.mxu0 %v1629_v18  ;;  %v1939_v32 = vsel %vm89_vm3, 1.0, %v1847_v19  ;;  %v1641_v41 = vpack.c.bf16 %v290_v38, %v289_v37  ;;  %v1951_v42 = vsel %vm95_vm6, 1.0, %v1847_v19  ;;  %v111_v43 = vsel %vm109_vm4, %v108_v28, %v107_v27  ;;  %v570_v5 = vld [vmem:[#allocation7 + $0xa0] sm:$0xff]  ;;  %v572_v13 = vld [vmem:[#allocation7 + $0xb0] sm:$0xff]  ;;  %v573_v14 = vld [vmem:[#allocation7 + $0xb8] sm:$0xff] }
  0x40   :  { %v106_v39 = vmul.f32 %v1939_v32, %v103_v33  ;;  %v113_v44 = vmul.f32 %v1951_v42, %v111_v43  ;;  %v1649_v47 = vpack.c.bf16 %v406_v46, %v405_v45  ;;  %v1653_v50 = vpack.c.bf16 %v399_v49, %v398_v48  ;;  %v689_v19 = vld [vmem:[#allocation7 + $0xf0] sm:$0xff]  ;;  %v690_v21 = vld [vmem:[#allocation7 + $0xf8] sm:$0xff]  ;;  %v682_v23 = vld [vmem:[#allocation7 + $0xc0] sm:$0xff]  ;;  %p1822_p0 = pnand %p1821_p13, %p1815_p10 }
  0x41   :  { %1487 = vmatmul.mubr.msk.f32.vlgmr.msra.gmra.mrb[0].mxu0 %vm123_vm0, %v60_v12  ;;  %v1669_v53 = vpack.c.bf16 %v688_v52, %v687_v51  ;;  %v1657_v2 = vpack.c.bf16 %v401_v60, %v400_v59  ;;  %v1661_v12 = vpack.c.bf16 %v571_v6, %v570_v5  ;;  %v1665_v16 = vpack.c.bf16 %v573_v14, %v572_v13  ;;  %v683_v24 = vld [vmem:[#allocation7 + $0xc8] sm:$0xff]  ;;  %v684_v36 = vld [vmem:[#allocation7 + $0xd0] sm:$0xff]  ;;  %v685_v37 = vld [vmem:[#allocation7 + $0xd8] sm:$0xff] }
  0x42   :  { %1632 = vmatpush3.bf16.msra.mxu0 %v1629_v18  ;;  %1497 = vmatprep.mubr.msk.f32.mxu0 %vm123_vm0, %v105_v26  ;;  %v1673_v22 = vpack.c.bf16 %v690_v21, %v689_v19  ;;  %v1677_v25 = vpack.c.bf16 %v683_v24, %v682_v23  ;;  %v952_v26 = vld [vmem:[#allocation7 + $0x120] sm:$0xff]  ;;  %v953_v27 = vld [vmem:[#allocation7 + $0x128] sm:$0xff]  ;;  %v1681_v43 = vpack.c.bf16 %v685_v37, %v684_v36  ;;  %v955_v59 = vld [vmem:[#allocation7 + $0x138] sm:$0xff] }
  0x43   :  { %1634 = vmatprep.subr.bf16.mxu0 %v1633_v29  ;;  %1650 = vmatprep.subr.bf16.mxu1 %v1649_v47  ;;  %v1693_v28 = vpack.c.bf16 %v953_v27, %v952_v26  ;;  %v854_v46 = vld [vmem:[#allocation7 + $0x100] sm:$0xff]  ;;  %v1144_v14 = vld [vmem:[#allocation7 + $0x170] sm:$0xff]  ;;  %v1233_v21 = vld [vmem:[#allocation7 + $0x188] sm:$0xff] }
  0x44   :  { %1652 = vmatpush3.bf16.msra.mxu1 %v1649_v47  ;;  %v855_v47 = vld [vmem:[#allocation7 + $0x108] sm:$0xff]  ;;  %v1142_v6 = vld [vmem:[#allocation7 + $0x160] sm:$0xff]  ;;  %v1234_v23 = vld [vmem:[#allocation7 + $0x190] sm:$0xff] }
  0x45   :  { %1654 = vmatprep.subr.bf16.mxu1 %v1653_v50  ;;  %v1232_v19 = vld [vmem:[#allocation7 + $0x180] sm:$0xff]  ;;  %v1235_v24 = vld [vmem:[#allocation7 + $0x198] sm:$0xff] }
  0x46   :  { %1636 = vmatpush3.bf16.msra.mxu0 %v1633_v29  ;;  %v1375_v29 = vld [vmem:[%s2043_s3 + $0x1] ss:$0 sm:$0xff]  ;;  %v1397_v37 = vld [vmem:[%s2043_s3 + $0x6] ss:$0 sm:$0xff] }
  0x47   :  { %1638 = vmatprep.subr.bf16.mxu0 %v1637_v34 }
  0x49   :  { %1498 = vmatmul.mubr.msk.f32.vlgmr.msra.gmra.mrb[0].mxu0 %vm123_vm0, %v106_v39 }
  0x4a   :  { %1640 = vmatpush3.bf16.msra.mxu0 %v1637_v34  ;;  %1508 = vmatprep.mubr.msk.f32.mxu0 %vm123_vm0, %v112_v40 }
  0x4b   :  { %1642 = vmatprep.subr.bf16.mxu0 %v1641_v41 }
  0x4e   :  { %1644 = vmatpush3.bf16.msra.mxu0 %v1641_v41 }
  0x4f   :  { %1670 = vmatprep.subr.bf16.mxu0 %v1669_v53 }
  0x51   :  { %1509 = vmatmul.mubr.msk.f32.vlgmr.msra.gmra.mrb[0].mxu0 %vm123_vm0, %v113_v44 }
  0x52   :  { %1672 = vmatpush3.bf16.msra.mxu0 %v1669_v53  ;;  %v1685_v53 = vpack.c.bf16 %v855_v47, %v854_v46  ;;  %v1389_v47 = vld [vmem:[%s2043_s3 + $0x4] ss:$0 sm:$0xff] }
  0x53   :  { %1674 = vmatprep.subr.bf16.mxu0 %v1673_v22 }
  0x56   :  { %1676 = vmatpush3.bf16.msra.mxu0 %v1673_v22  ;;  %v1717_v22 = vpack.c.bf16 %v1233_v21, %v1232_v19 }
  0x57   :  { %1678 = vmatprep.subr.bf16.mxu0 %v1677_v25 }
 0x124   :  { %v1510_v55 = vpop.f32.mrb[0].mxu0 }
 0x125   :  { %v382_v56 = vadd.f32 %v1510_v55, %v1367_v54  ;;  %v363_v57 = vpop.f32.mrb[1].mxu0  ;;  %v857_v55 = vld [vmem:[#allocation7 + $0x118] sm:$0xff] }
 0x126   :  { %v381_v58 = vadd.f32 %v1367_v54, %v363_v57  ;;  %v856_v54 = vld [vmem:[#allocation7 + $0x110] sm:$0xff] }
 0x127   :  { %v384_v61 = vmax.f32 %v382_v56, 0.0  ;;  %v1689_v57 = vpack.c.bf16 %v857_v55, %v856_v54 }
 0x128   :  { %v383_v62 = vmax.f32 %v381_v58, 0.0 }
 0x129   :  { %v386_v63 = vrot.slane %v384_v61, 7  ;;  %v392_v0 = vrot.slane %v384_v61, 1 }
 0x12a   :  { %v385_v3 = vrot.slane %v383_v62, 7  ;;  %v391_v4 = vrot.slane %v383_v62, 1  ;;  %1519 = vmatprep.mubr.msk.f32.mxu1 %vm123_vm0, %v383_v62 }
 0x12b   :  { %1520 = vmatmul.mubr.msk.f32.vlgmr.msra.gmra.mrb[0].mxu1 %vm123_vm0, %v384_v61  ;;  %v1049_v61 = vld [vmem:[#allocation7 + $0x148] sm:$0xff] }
 0x12c   :  { %v387_v7 = vsel %vm102_vm1, %v385_v3, %v386_v63  ;;  %v394_v8 = vsel %vm109_vm4, %v392_v0, %v391_v4  ;;  %1656 = vmatpush3.bf16.msra.mxu1 %v1653_v50  ;;  %v388_v9 = vsel %vm102_vm1, %v386_v63, %v385_v3  ;;  %v393_v10 = vsel %vm109_vm4, %v391_v4, %v392_v0  ;;  %v1051_v4 = vld [vmem:[#allocation7 + $0x158] sm:$0xff] }
 0x12d   :  { %1658 = vmatprep.subr.bf16.mxu1 %v1657_v2  ;;  %v389_v11 = vmul.f32 %v1932_v20, %v388_v9  ;;  %v390_v15 = vmul.f32 %v1939_v32, %v387_v7  ;;  %v395_v17 = vmul.f32 %v1944_v35, %v393_v10  ;;  %v396_v18 = vmul.f32 %v1951_v42, %v394_v8  ;;  %v1143_v7 = vld [vmem:[#allocation7 + $0x168] sm:$0xff]  ;;  %v1385_v9 = vld [vmem:[%s2043_s3 + $0x3] ss:$0 sm:$0xff] }
 0x12e   :  { %v1709_v8 = vpack.c.bf16 %v1143_v7, %v1142_v6 }
 0x12f   :  { %1530 = vmatprep.mubr.msk.f32.mxu1 %vm123_vm0, %v389_v11 }
 0x130   :  { %1660 = vmatpush3.bf16.msra.mxu1 %v1657_v2 }
 0x131   :  { %1662 = vmatprep.subr.bf16.mxu1 %v1661_v12 }
 0x133   :  { %1531 = vmatmul.mubr.msk.f32.vlgmr.msra.gmra.mrb[0].mxu1 %vm123_vm0, %v390_v15  ;;  %v1145_v15 = vld [vmem:[#allocation7 + $0x178] sm:$0xff] }
 0x134   :  { %1664 = vmatpush3.bf16.msra.mxu1 %v1661_v12  ;;  %1541 = vmatprep.mubr.msk.f32.mxu1 %vm123_vm0, %v395_v17 }
 0x135   :  { %1666 = vmatprep.subr.bf16.mxu1 %v1665_v16 }
 0x138   :  { %1668 = vmatpush3.bf16.msra.mxu1 %v1665_v16 }
 0x139   :  { %1694 = vmatprep.subr.bf16.mxu1 %v1693_v28 }
 0x13b   :  { %1542 = vmatmul.mubr.msk.f32.vlgmr.msra.gmra.mrb[0].mxu1 %vm123_vm0, %v396_v18  ;;  %v1713_v18 = vpack.c.bf16 %v1145_v15, %v1144_v14 }
 0x13c   :  { %1696 = vmatpush3.bf16.msra.mxu1 %v1693_v28  ;;  %v1393_v28 = vld [vmem:[%s2043_s3 + $0x5] ss:$0 sm:$0xff] }
 0x20e   :  { %v1543_v30 = vpop.f32.mrb[0].mxu1 }
 0x20f   :  { %v666_v31 = vadd.f32 %v1543_v30, %v1375_v29  ;;  %v646_v33 = vpop.f32.mrb[1].mxu1 }
 0x210   :  { %v665_v34 = vadd.f32 %v1375_v29, %v646_v33 }
 0x211   :  { %v668_v38 = vmax.f32 %v666_v31, 0.0 }
 0x212   :  { %v667_v39 = vmax.f32 %v665_v34, 0.0 }
 0x213   :  { %v670_v40 = vrot.slane %v668_v38, 7  ;;  %v676_v41 = vrot.slane %v668_v38, 1 }
 0x214   :  { %v669_v44 = vrot.slane %v667_v39, 7  ;;  %v675_v45 = vrot.slane %v667_v39, 1  ;;  %1552 = vmatprep.mubr.msk.f32.mxu0 %vm123_vm0, %v667_v39 }
 0x215   :  { %1553 = vmatmul.mubr.msk.f32.vlgmr.msra.gmra.mrb[2].mxu0 %vm123_vm0, %v668_v38 }
 0x216   :  { %v671_v48 = vsel %vm102_vm1, %v669_v44, %v670_v40  ;;  %v678_v49 = vsel %vm109_vm4, %v676_v41, %v675_v45  ;;  %1680 = vmatpush3.bf16.msra.mxu0 %v1677_v25  ;;  %v672_v50 = vsel %vm102_vm1, %v670_v40, %v669_v44  ;;  %v677_v51 = vsel %vm109_vm4, %v675_v45, %v676_v41 }
 0x217   :  { %1682 = vmatprep.subr.bf16.mxu0 %v1681_v43  ;;  %v673_v52 = vmul.f32 %v1932_v20, %v672_v50  ;;  %v674_v56 = vmul.f32 %v1939_v32, %v671_v48  ;;  %v679_v58 = vmul.f32 %v1944_v35, %v677_v51  ;;  %v680_v1 = vmul.f32 %v1951_v42, %v678_v49  ;;  %v954_v20 = vld [vmem:[#allocation7 + $0x130] sm:$0xff]  ;;  %v1048_v32 = vld [vmem:[#allocation7 + $0x140] sm:$0xff]  ;;  %v1326_v48 = vld [vmem:[#allocation5 + $0x8] sm:$0xff] }
 0x218   :  { %v1697_v60 = vpack.c.bf16 %v955_v59, %v954_v20  ;;  %v1701_v62 = vpack.c.bf16 %v1049_v61, %v1048_v32  ;;  %v1383_v35 = vld [vmem:[%s2043_s3 + $0x2] ss:$0 sm:$0xff]  ;;  %v1050_v42 = vld [vmem:[#allocation7 + $0x150] sm:$0xff]  ;;  %v1721_v25 = vpack.c.bf16 %v1235_v24, %v1234_v23 }
 0x219   :  { %1563 = vmatprep.mubr.msk.f32.mxu0 %vm123_vm0, %v673_v52  ;;  %v1705_v5 = vpack.c.bf16 %v1051_v4, %v1050_v42  ;;  %v1325_v49 = vld [vmem:[#allocation5] sm:$0xff] }
 0x21a   :  { %1684 = vmatpush3.bf16.msra.mxu0 %v1681_v43  ;;  %1698 = vmatprep.subr.bf16.mxu1 %v1697_v60 }
 0x21b   :  { %1686 = vmatprep.subr.bf16.mxu0 %v1685_v53  ;;  %1700 = vmatpush3.bf16.msra.mxu1 %v1697_v60 }
 0x21c   :  { %1702 = vmatprep.subr.bf16.mxu1 %v1701_v62 }
 0x21d   :  { %1564 = vmatmul.mubr.msk.f32.vlgmr.msra.gmra.mrb[2].mxu0 %vm123_vm0, %v674_v56 }
 0x21e   :  { %1688 = vmatpush3.bf16.msra.mxu0 %v1685_v53  ;;  %1574 = vmatprep.mubr.msk.f32.mxu0 %vm123_vm0, %v679_v58 }
 0x21f   :  { %1690 = vmatprep.subr.bf16.mxu0 %v1689_v57 }
 0x222   :  { %1692 = vmatpush3.bf16.msra.mxu0 %v1689_v57 }
 0x223   :  { %1718 = vmatprep.subr.bf16.mxu0 %v1717_v22 }
 0x225   :  { %1575 = vmatmul.mubr.msk.f32.vlgmr.msra.gmra.mrb[2].mxu0 %vm123_vm0, %v680_v1 }
 0x226   :  { %1720 = vmatpush3.bf16.msra.mxu0 %v1717_v22 }
 0x227   :  { %1722 = vmatprep.subr.bf16.mxu0 %v1721_v25 }
 0x22a   :  { %1724 = vmatpush3.bf16.msra.mxu0 %v1721_v25 }
 0x2f8   :  { %v1576_v63 = vpop.f32.mrb[2].mxu0 }
 0x2f9   :  { %v930_v0 = vpop.f32.mrb[3].mxu0  ;;  %v950_v3 = vadd.f32 %v1576_v63, %v1383_v35 }
 0x2fa   :  { %v949_v2 = vadd.f32 %v1383_v35, %v930_v0 }
 0x2fc   :  { %1585 = vmatprep.mubr.msk.f32.mxu1 %vm123_vm0, %v949_v2 }
 0x2fd   :  { %1586 = vmatmul.mubr.msk.f32.vlgmr.msra.gmra.mrb[2].mxu1 %vm123_vm0, %v950_v3 }
 0x2fe   :  { %1704 = vmatpush3.bf16.msra.mxu1 %v1701_v62 }
 0x2ff   :  { %1706 = vmatprep.subr.bf16.mxu1 %v1705_v5 }
 0x302   :  { %1708 = vmatpush3.bf16.msra.mxu1 %v1705_v5 }
 0x303   :  { %1710 = vmatprep.subr.bf16.mxu1 %v1709_v8 }
 0x3d0   :  { %v1587_v10 = vpop.f32.mrb[2].mxu1 }
 0x3d1   :  { %v1042_v11 = vadd.f32 %v1587_v10, %v1385_v9  ;;  %v1036_v12 = vpop.f32.mrb[3].mxu1 }
 0x3d2   :  { %v1037_v13 = vadd.f32 %v1385_v9, %v1036_v12 }
 0x3d3   :  { %v1046_v17 = vmax.f32 %v1042_v11, 0.0 }
 0x3d4   :  { %v1045_v16 = vmax.f32 %v1037_v13, 0.0 }
 0x3d6   :  { %1596 = vmatprep.mubr.msk.f32.mxu1 %vm123_vm0, %v1045_v16 }
 0x3d7   :  { %1597 = vmatmul.mubr.msk.f32.vlgmr.msra.gmra.mrb[4].mxu1 %vm123_vm0, %v1046_v17 }
 0x3d8   :  { %1712 = vmatpush3.bf16.msra.mxu1 %v1709_v8  ;;  %1607 = vmatprep.mubr.msk.f32.mxu1 %vm123_vm0, %v949_v2 }
 0x3d9   :  { %1714 = vmatprep.subr.bf16.mxu1 %v1713_v18 }
 0x3dc   :  { %1716 = vmatpush3.bf16.msra.mxu1 %v1713_v18 }
 0x3df   :  { %1608 = vmatmul.mubr.msk.f32.vlgmr.msra.gmra.mrb[6].mxu1 %vm123_vm0, %v950_v3 }
 0x4aa   :  { %v1598_v26 = vpop.f32.mrb[4].mxu1 }
 0x4ab   :  { %v1132_v27 = vpop.f32.mrb[5].mxu1  ;;  %v1138_v52 = vadd.f32 %v1598_v26, %v1389_v47 }
 0x4ac   :  { %v1133_v54 = vadd.f32 %v1389_v47, %v1132_v27 }
 0x4b2   :  { %v1609_v29 = vpop.f32.mrb[6].mxu1 }
 0x4b3   :  { %v1226_v30 = vadd.f32 %v1609_v29, %v1393_v28  ;;  %v1220_v31 = vpop.f32.mrb[7].mxu1 }
 0x4b4   :  { %v1221_v33 = vadd.f32 %v1393_v28, %v1220_v31 }
 0x4b5   :  { %v1230_v36 = vmax.f32 %v1226_v30, 0.0 }
 0x4b6   :  { %v1229_v34 = vmax.f32 %v1221_v33, 0.0 }
 0x4b8   :  { %1618 = vmatprep.mubr.msk.f32.mxu0 %vm123_vm0, %v1229_v34 }
 0x4b9   :  { %1619 = vmatmul.mubr.msk.f32.vlgmr.msra.gmra.mrb[4].mxu0 %vm123_vm0, %v1230_v36 }
 0x58c   :  { %v1620_v38 = vpop.f32.mrb[4].mxu0 }
 0x58d   :  { %v1322_v39 = vadd.f32 %v1620_v38, %v1397_v37  ;;  %v1316_v40 = vpop.f32.mrb[5].mxu0 }
 0x58e   :  { %v1317_v41 = vadd.f32 %v1397_v37, %v1316_v40 }
 0x58f   :  { %v1328_v43 = vmul.f32 0.5, %v1322_v39 }
 0x590   :  { %v1327_v44 = vmul.f32 0.5, %v1317_v41 }
 0x591   :  { %v1331_v45 = vmul.f32 1.442695, %v1328_v43 }
 0x592   :  { %v1329_v46 = vmul.f32 1.442695, %v1327_v44 }
 0x593   :  { %1744 = vpow2.f32 %v1331_v45 }
 0x594   :  { %1746 = vpow2.f32 %v1329_v46 }
 0x59d   :  { %v1745_v50 = vpop.eup %1744 }
 0x59e   :  { %v1747_v51 = vpop.eup %1746  ;;  %v1334_v53 = vmul.f32 %v1745_v50, %v1326_v48 }
 0x59f   :  { %v1333_v55 = vmul.f32 %v1747_v51, %v1325_v49 }
 0x5a0   :  { %v1336_v56 = vadd.f32 %v1334_v53, %v1138_v52 }
 0x5a1   :  { %v1335_v57 = vadd.f32 %v1333_v55, %v1133_v54 }
 0x5a2   :  { %1338 = vst.msk [vmem:[#allocation8 + $0x8] sm:$0xff] %vm123_vm0, %v1336_v56 }
 0x5a3   :  { %1337 = vst.msk [vmem:[#allocation8] sm:$0xff] %vm123_vm0, %v1335_v57 }
 0x5a4   :  { %1825 = shalt.err (!%p1822_p0)
}
 0x5a5   :  { %s1826_s17 = scalar_lea.hbm %s2044_s4, 256 }
 0x5a6   :  { %p1827_p1 = scmp.ne.s32.totalorder %s2044_s4, %s1826_s17  ;;  %p1830_p2 = scmp.lt.u32.totalorder %s1826_s17, %s2044_s4 }
 0x5a8   :  { %p1832_p3 = pnand %p1830_p2, %p1827_p1 }
 0x5aa   :  { %1835 = shalt.err (!%p1832_p3)
}
 0x5ab   :  { %1350 = dma.vmem_to_hbm [thread:$0]  %s1345_s14, 256, %s2044_s4, [#allocation4], %s1844_s27, %s1844_s27, %s1845_s28  }
 0x5ac   :  { %1840 = dma.done.wait [#allocation4], 256  }
 0x5ad   :  { %1841 = vsyncadd [#allocation4], 4294967040 }
 0x5ae   :  { %1354 = vsyncpa [#allocation3], 1 }
 0x5af   :  { %1355 = vsyncpa [#allocation6], 1 }
 0x5b0   :  { %1356 = vsyncpa [#allocation4], 1 }

</bundles_post_ra>
